<compile_context>
chip_gen: v7x
topology: tpu7x:2x2x1
jax: 0.10.0
libtpu: 0.0.40
codegen_flags: <defaults>
</compile_context>

<pallas_src>
import jax
import jax.numpy as jnp
from jax.experimental import pallas as pl
from jax.experimental.pallas import tpu as pltpu


def _identity_dma_kernel(x_hbm, o_hbm, sem):
    # Single whole-array HBM->HBM DMA: no VMEM round-trip, no grid loop.
    cp = pltpu.make_async_copy(x_hbm, o_hbm, sem)
    cp.start()
    cp.wait()


def truthful_strategy_play(x: jax.Array, dummy: jax.Array | None = None) -> jax.Array:
    """Pallas implementation of TruthfulStrategy.play / .forward: returns x."""
    del dummy  # registered parameter, unused by forward (matches PyTorch module)

    # Empty input: nothing to copy (also avoids a zero-size DMA).
    if x.size == 0:
        return x

    orig_shape = x.shape
    # 0-d scalars: give the DMA a well-formed 2D ref; everything else is copied
    # in its natural layout (whole-ref DMA has no (8,128) tiling constraint).
    x2 = x.reshape(1, 1) if x.ndim == 0 else x

    out = pl.pallas_call(
        _identity_dma_kernel,
        out_shape=jax.ShapeDtypeStruct(x2.shape, x2.dtype),
        in_specs=[pl.BlockSpec(memory_space=pl.ANY)],   # raw HBM ref, no auto-DMA
        out_specs=pl.BlockSpec(memory_space=pl.ANY),    # raw HBM ref, no auto-DMA
        scratch_shapes=[pltpu.SemaphoreType.DMA],       # one DMA-completion semaphore
    )(x2)

    return out.reshape(orig_shape)


if __name__ == "__main__":
    key = jax.random.PRNGKey(0)
    # Small "valuations" tensor: batch=8, n_items=16 (any shape works).
    x = jax.random.uniform(key, (8, 16), dtype=jnp.float32)

    # Deterministic parameter init, mirroring nn.Parameter(torch.zeros(1)).
    dummy = jnp.zeros((1,), dtype=jnp.float32)

    y = truthful_strategy_play(x, dummy)
    y = jax.block_until_ready(y)

    assert y.shape == x.shape and y.dtype == x.dtype
    assert bool(jnp.all(y == x))
    print("KERNEL_OK")
</pallas_src>

<mosaic_0001>
module attributes {stable_mosaic.version = 11 : i64} {
  func.func @_identity_dma_kernel(%arg0: memref<8x16xf32, #tpu.memory_space<any>>, %arg1: memref<8x16xf32, #tpu.memory_space<any>>, %arg2: memref<!tpu.dma_semaphore, #tpu.memory_space<semaphore_mem>>) attributes {dimension_semantics = [], scalar_prefetch = 0 : i64, scratch_operands = 1 : i64, tpu.core_type = #tpu.core_type<tc>} {
    tpu.enqueue_dma source(%arg0 : memref<8x16xf32, #tpu.memory_space<any>>) target(%arg1 : memref<8x16xf32, #tpu.memory_space<any>>) target_semaphore(%arg2 : memref<!tpu.dma_semaphore, #tpu.memory_space<semaphore_mem>>)
    tpu.wait_dma2 semaphore(%arg2 : memref<!tpu.dma_semaphore, #tpu.memory_space<semaphore_mem>>) src(%arg0 : memref<8x16xf32, #tpu.memory_space<any>>) dst(%arg1 : memref<8x16xf32, #tpu.memory_space<any>>)
    return
  }
}

</mosaic_0001>

<bundles_post_ra>
// kernel: tpu_custom_call.1
= control target key start
LH: loop header
LB: loop body
LE: loop exit
PB: predicated region body
PF: predicated region fallthrough
CT: control target
= control target key end

     0   :  { %s34_s6 = smov [#allocation2]   ;;  %s35_s7 = smov [#allocation3]   ;;  %s53_s0 = inlined_call_operand.hbm [shape: f32[8,16], index: 0, kind: input, shape index: {}]   ;;  %s54_s1 = inlined_call_operand.hbm [shape: f32[8,16], index: 1, kind: output, shape index: {}]  }
   0x1   :  { %s36_s8 = smov 0  }
   0x2   :  { %18 = dma.general %s53_s0, 128, %s54_s1, %s34_s6, %s35_s7, [#allocation4], %s36_s8, 0  }
   0x3   :  { %32 = dma.done.wait [#allocation2], 128 }
   0x4   :  { %33 = vsyncadd [#allocation2], 4294967168 }
   0x5   :  { %22 = vsyncmov [#allocation2] }
   0x8   :  { %s23_s13 = vpop.sfrf %22 }
   0x9   :  { %p28_p0 = scmp.ne.s32.totalorder %s23_s13, 0 }
   0xb   :  { %27 = shalt.err (%p28_p0)  }

</bundles_post_ra>
